<compile_context>
chip_gen: v6e
topology: v6e:2x2x1
jax: 0.10.0
libtpu: 0.0.40
codegen_flags: <defaults>
</compile_context>

<pallas_src>
import functools

import jax
import jax.numpy as jnp
from jax.experimental import pallas as pl
from jax.experimental.pallas import tpu as pltpu

_LANE = 128


def _round_up(x, m):
    return ((x + m - 1) // m) * m


# ---------------------------------------------------------------------------
# Fused single-pass kernel: one batch slab (C, HW) per grid step.
# ---------------------------------------------------------------------------
def _fused_kernel(x_ref, w_ref, o_ref, *, inv_hw):
    # x_ref: (C, HW) slab of one batch; w_ref: (C_out, C_in) f32 centre tap.
    xf = x_ref[...].astype(jnp.float32)                            # (C, HW)
    mean = jnp.sum(xf, axis=-1, keepdims=True) * inv_hw            # (C, 1) f32
    conv = jnp.dot(w_ref[...], mean,
                   preferred_element_type=jnp.float32)             # (C, 1) f32
    gate = jax.nn.sigmoid(conv)                                    # f32 gate
    o_ref[...] = (xf * gate).astype(o_ref.dtype)


# ---------------------------------------------------------------------------
# Fallback pass 1: lane-dense per-row partial sums (rows = B*C, reduce H*W).
# Output block (row_tile, 128) f32 stays VMEM-resident across the hw axis.
# ---------------------------------------------------------------------------
def _partial_sum_kernel(x_ref, s_ref, *, hw, hw_tile):
    j = pl.program_id(1)

    @pl.when(j == 0)
    def _():
        s_ref[...] = jnp.zeros_like(s_ref)

    xf = x_ref[...].astype(jnp.float32)                            # (rt, hw_tile)
    if hw % hw_tile != 0:
        # Ragged HW: zero out-of-range lanes of the last (partial) block.
        col = jax.lax.broadcasted_iota(jnp.int32, xf.shape, 1) + j * hw_tile
        xf = jnp.where(col < hw, xf, 0.0)

    # Accumulate 128-lane strips with plain VPU adds (no per-step XLU reduce,
    # no width-1 masked stores); the 128 -> 1 collapse happens in XLA glue.
    acc = jnp.zeros((xf.shape[0], _LANE), jnp.float32)
    for k in range(hw_tile // _LANE):
        acc = acc + xf[:, k * _LANE:(k + 1) * _LANE]
    s_ref[...] += acc


# ---------------------------------------------------------------------------
# Fallback pass 2: gated rescale  y[r, s] = x[r, s] * gate[r]   (gate in f32)
# ---------------------------------------------------------------------------
def _scale_kernel(x_ref, g_ref, o_ref):
    o_ref[...] = (x_ref[...].astype(jnp.float32) * g_ref[...]).astype(o_ref.dtype)


def _tile_sizes(bc, hw, itemsize, target_bytes=2 * 1024 * 1024, max_hw_tile=4096):
    """Byte-budgeted, dtype-aware tiles: hw_tile multiple of 128, row_tile a
    multiple of the dtype's sublane packing (8 for 4B, 16 for 2B, 32 for 1B)."""
    sub = max(8, 32 // itemsize)
    hw_tile = min(_round_up(hw, _LANE), max_hw_tile)
    rows = target_bytes // (hw_tile * itemsize)
    rows = (rows // sub) * sub
    row_tile = max(sub, min(rows, _round_up(bc, sub)))
    return row_tile, hw_tile


def efficient_spatial_attention(x, conv1d_weight, *, force_two_pass=False):
    """x: (B, C, H, W); conv1d_weight: (C, C, K), no bias, K odd.

    NOTE: the centre-tap reduction of the Conv1d is valid only for the
    module's defaults: stride=1, dilation=1, groups=1, padding=K//2, bias=False.
    """
    B, C, H, W = x.shape
    assert conv1d_weight.ndim == 3 and conv1d_weight.shape[:2] == (C, C), (
        "expected Conv1d weight of shape (C, C, K) (groups=1)")
    K = conv1d_weight.shape[-1]
    assert K % 2 == 1, "centre-tap reduction requires odd kernel_size"

    HW = H * W
    BC = B * C
    itemsize = jnp.dtype(x.dtype).itemsize
    w_center = conv1d_weight[:, :, K // 2].astype(jnp.float32)      # (C_out, C_in)

    # ---- fused single-pass path: one (C, HW) batch slab resident in VMEM ----
    # Per-step VMEM estimate: 2x in-block + 2x out-block (double buffered)
    # + ~2 f32 temps + the (C,C) weight.  Conservative vs v7x's 64 MiB VMEM.
    fused_est = C * HW * (4 * itemsize + 8) + 2 * C * C * 4 + (1 << 20)
    if not force_two_pass and fused_est <= 24 * 1024 * 1024:
        x3 = x.reshape(B, C, HW)
        y3 = pl.pallas_call(
            functools.partial(_fused_kernel, inv_hw=1.0 / float(HW)),
            out_shape=jax.ShapeDtypeStruct((B, C, HW), x.dtype),
            grid=(B,),
            in_specs=[
                pl.BlockSpec((None, C, HW), lambda b: (b, 0, 0)),
                pl.BlockSpec((C, C), lambda b: (0, 0)),
            ],
            out_specs=pl.BlockSpec((None, C, HW), lambda b: (b, 0, 0)),
            compiler_params=pltpu.CompilerParams(
                dimension_semantics=("parallel",),
                vmem_limit_bytes=48 * 1024 * 1024),
            cost_estimate=pl.CostEstimate(
                flops=2 * BC * HW + 2 * B * C * C,
                transcendentals=BC,
                bytes_accessed=2 * BC * HW * itemsize + C * C * 4),
        )(x3, w_center)
        return y3.reshape(B, C, H, W)

    # ---- fallback: two tiled HBM passes -------------------------------------
    x_flat = x.reshape(BC, HW)
    row_tile, hw_tile = _tile_sizes(BC, HW, itemsize)
    grid = (pl.cdiv(BC, row_tile), pl.cdiv(HW, hw_tile))

    # Pass 1: lane-dense (BC, 128) partial sums; reduction axis last/arbitrary.
    partials = pl.pallas_call(
        functools.partial(_partial_sum_kernel, hw=HW, hw_tile=hw_tile),
        out_shape=jax.ShapeDtypeStruct((BC, _LANE), jnp.float32),
        grid=grid,
        in_specs=[pl.BlockSpec((row_tile, hw_tile), lambda i, j: (i, j))],
        out_specs=pl.BlockSpec((row_tile, _LANE), lambda i, j: (i, 0)),
        compiler_params=pltpu.CompilerParams(
            dimension_semantics=("parallel", "arbitrary"),
            vmem_limit_bytes=32 * 1024 * 1024),
        cost_estimate=pl.CostEstimate(
            flops=BC * HW, transcendentals=0,
            bytes_accessed=BC * HW * itemsize + BC * _LANE * 4),
    )(x_flat)

    # Gate: 128->1 collapse + mean + centre-tap (C,C) matmul + sigmoid.
    # O(B*C*C) work — tiny, stays in XLA glue; gate kept in f32.
    avg = jnp.sum(partials, axis=-1).reshape(B, C) * (1.0 / float(HW))
    gate = jax.nn.sigmoid(avg @ w_center.T).reshape(BC, 1)          # f32

    # Pass 2: gated rescale; both axes parallel (megacore / dual-TC sharding).
    y_flat = pl.pallas_call(
        _scale_kernel,
        out_shape=jax.ShapeDtypeStruct((BC, HW), x.dtype),
        grid=grid,
        in_specs=[
            pl.BlockSpec((row_tile, hw_tile), lambda i, j: (i, j)),
            pl.BlockSpec((row_tile, 1), lambda i, j: (i, 0)),
        ],
        out_specs=pl.BlockSpec((row_tile, hw_tile), lambda i, j: (i, j)),
        compiler_params=pltpu.CompilerParams(
            dimension_semantics=("parallel", "parallel"),
            vmem_limit_bytes=32 * 1024 * 1024),
        cost_estimate=pl.CostEstimate(
            flops=BC * HW, transcendentals=0,
            bytes_accessed=2 * BC * HW * itemsize + BC * 4),
    )(x_flat, gate)

    return y_flat.reshape(B, C, H, W)


def _reference(x, conv1d_weight):
    # Pure-JAX mirror of the PyTorch module (full conv over the zero-padded
    # length-1 sequence) for verification.
    B, C, H, W = x.shape
    K = conv1d_weight.shape[-1]
    pad = K // 2
    avg = jnp.mean(x, axis=(2, 3))                    # (B, C)
    seq = avg[:, :, None]                             # (B, C, 1)
    seq_p = jnp.pad(seq, ((0, 0), (0, 0), (pad, pad)))
    conv = jnp.einsum('bik,oik->bo', seq_p[:, :, 0:K], conv1d_weight)
    gate = jax.nn.sigmoid(conv)[:, :, None, None]
    return x * gate


if __name__ == "__main__":
    key = jax.random.PRNGKey(0)
    kx, kw, kx2, kw2 = jax.random.split(key, 4)

    # Case 1: small canonical shape -> fused single-pass path.
    B, C, H, W, K = 2, 4, 16, 16, 3
    x = jax.random.normal(kx, (B, C, H, W), dtype=jnp.float32)
    conv1d_weight = (jax.random.uniform(kw, (C, C, K), dtype=jnp.float32)
                     - 0.5) * (2.0 / (C * K) ** 0.5)
    y = jax.block_until_ready(efficient_spatial_attention(x, conv1d_weight))
    y_ref = _reference(x, conv1d_weight)
    assert y.shape == (B, C, H, W)
    assert jnp.allclose(y, y_ref, atol=1e-5, rtol=1e-5), "fused path mismatch"

    # Case 2: ragged spatial size (HW=196, not a multiple of 128), forced
    # through the two-pass tiled fallback to exercise cdiv grids + lane masks.
    B2, C2, H2, W2 = 2, 16, 14, 14
    x2 = jax.random.normal(kx2, (B2, C2, H2, W2), dtype=jnp.float32)
    w2 = (jax.random.uniform(kw2, (C2, C2, K), dtype=jnp.float32)
          - 0.5) * (2.0 / (C2 * K) ** 0.5)
    y2 = jax.block_until_ready(
        efficient_spatial_attention(x2, w2, force_two_pass=True))
    y2_ref = _reference(x2, w2)
    assert y2.shape == (B2, C2, H2, W2)
    assert jnp.allclose(y2, y2_ref, atol=1e-5, rtol=1e-5), "two-pass mismatch"

    print("KERNEL_OK")
</pallas_src>

<mosaic_0001>
module attributes {stable_mosaic.version = 11 : i64} {
  func.func @_fused_kernel(%arg0: i32, %arg1: memref<1x4x256xf32, #tpu.memory_space<vmem>>, %arg2: memref<4x4xf32, #tpu.memory_space<vmem>>, %arg3: memref<1x4x256xf32, #tpu.memory_space<vmem>>) attributes {dimension_semantics = [#tpu.dimension_semantics<parallel>], iteration_bounds = array<i64: 2>, scalar_prefetch = 0 : i64, scratch_operands = 0 : i64, tpu.core_type = #tpu.core_type<tc>, window_params = [{transform_indices = @transform_0, window_bounds = array<i64: 1, 4, 256>}, {pipeline_mode = #tpu.pipeline_mode<synchronous>, transform_indices = @transform_1, window_bounds = array<i64: 4, 4>}, {transform_indices = @transform_2, window_bounds = array<i64: 1, 4, 256>}]} {
    %c0 = arith.constant 0 : index
    %c0_0 = arith.constant 0 : index
    %c0_1 = arith.constant 0 : index
    %0 = vector.load %arg1[%c0, %c0_0, %c0_1] : memref<1x4x256xf32, #tpu.memory_space<vmem>>, vector<1x4x256xf32>
    %1 = vector.shape_cast %0 : vector<1x4x256xf32> to vector<4x256xf32>
    %cst = arith.constant dense<0.000000e+00> : vector<4xf32>
    %2 = vector.multi_reduction <add>, %1, %cst [1] : vector<4x256xf32> to vector<4xf32>
    %3 = vector.shape_cast %2 : vector<4xf32> to vector<4x1xf32>
    %cst_2 = arith.constant 3.906250e-03 : f32
    %4 = vector.broadcast %cst_2 : f32 to vector<4x1xf32>
    %5 = arith.mulf %3, %4 : vector<4x1xf32>
    %c0_3 = arith.constant 0 : index
    %c0_4 = arith.constant 0 : index
    %6 = vector.load %arg2[%c0_3, %c0_4] : memref<4x4xf32, #tpu.memory_space<vmem>>, vector<4x4xf32>
    %cst_5 = arith.constant dense<0.000000e+00> : vector<4x1xf32>
    %7 = tpu.matmul %6, %5, %cst_5 {dimension_numbers = #tpu.dot_dimension_numbers<[1], [0], [0], [1], [0, 0, 1, 1], [], []>} : vector<4x4xf32>, vector<4x1xf32>, vector<4x1xf32> -> vector<4x1xf32>
    %8 = arith.negf %7 : vector<4x1xf32>
    %9 = math.exp %8 : vector<4x1xf32>
    %cst_6 = arith.constant 1.000000e+00 : f32
    %10 = vector.broadcast %cst_6 : f32 to vector<4x1xf32>
    %11 = arith.addf %10, %9 : vector<4x1xf32>
    %12 = arith.divf %10, %11 : vector<4x1xf32>
    %13 = vector.broadcast %12 : vector<4x1xf32> to vector<4x256xf32>
    %14 = arith.mulf %1, %13 : vector<4x256xf32>
    %c0_7 = arith.constant 0 : index
    %c0_8 = arith.constant 0 : index
    %c0_9 = arith.constant 0 : index
    %15 = vector.load %arg3[%c0_7, %c0_8, %c0_9] : memref<1x4x256xf32, #tpu.memory_space<vmem>>, vector<1x4x256xf32>
    %16 = vector.shape_cast %15 : vector<1x4x256xf32> to vector<4x256xf32>
    %17 = vector.shape_cast %14 : vector<4x256xf32> to vector<1x4x256xf32>
    tpu.vector_store %arg3[%c0_7, %c0_8, %c0_9], %17 {strides = array<i32>} : memref<1x4x256xf32, #tpu.memory_space<vmem>>, vector<1x4x256xf32>,
    return
  }
  func.func @transform_0(%arg0: i32) -> (i32, i32, i32) {
    %c0_i32 = arith.constant 0 : i32
    %c0_i32_0 = arith.constant 0 : i32
    %c0_i32_1 = arith.constant 0 : i32
    return %arg0, %c0_i32, %c0_i32_0 : i32, i32, i32
  }
  func.func @transform_1(%arg0: i32) -> (i32, i32) {
    %c0_i32 = arith.constant 0 : i32
    %c0_i32_0 = arith.constant 0 : i32
    %c0_i32_1 = arith.constant 0 : i32
    return %c0_i32, %c0_i32_0 : i32, i32
  }
  func.func @transform_2(%arg0: i32) -> (i32, i32, i32) {
    %c0_i32 = arith.constant 0 : i32
    %c0_i32_0 = arith.constant 0 : i32
    %c0_i32_1 = arith.constant 0 : i32
    return %arg0, %c0_i32, %c0_i32_0 : i32, i32, i32
  }
}

</mosaic_0001>

<bundles_post_ra>
// kernel: tpu_custom_call.1
= control target key start
LH: loop header
LB: loop body
LE: loop exit
PB: predicated region body
PF: predicated region fallthrough
CT: control target
= control target key end

     0   :  { %7 = vsyncpa [#allocation3], 0  ;;  %s788_s0 = inlined_call_operand.hbm [shape: f32[2,4,256], index: 0, kind: input, shape index: {}]   ;;  %s789_s1 = inlined_call_operand.hbm [shape: f32[4,4], index: 1, kind: input, shape index: {}]   ;;  %s790_s2 = inlined_call_operand.hbm [shape: f32[2,4,256], index: 2, kind: output, shape index: {}]  }
   0x1   :  { %9 = vsyncpa [#allocation3 + $0x1], 0 }
   0x2   :  { %10 = vsyncpa [#allocation6], 0 }
   0x3   :  { %11 = vsyncpa [#allocation4], 0 }
   0x4   :  { %13 = vsyncpa [#allocation4 + $0x1], 0  ;;  %s618_s9 = smov 0   ;;  %s620_s10 = smov 0  }
   0x5   :  { %s622_s11 = smov 0   ;;  %s624_s12 = smov 0  }
   0x6 LB: > { %s639_s13 = sadd.s32 4294967295, %s594_s12   ;;  %s377_s14 = sadd.s32 4294967294, %s594_s12   ;;  %s594_s12 = sphi %s624_s12, %s813_s12   ;;  %s590_s11 = sphi %s622_s11, %s812_s11   ;;  %s586_s10 = sphi %s620_s10, %s811_s10   ;;  %s582_s9 = sphi %s618_s9, %s810_s9  }
   0x7   : > { %p39_p0 = scmp.ne.s32.totalorder %s586_s10, %s582_s9  ;;  %p791_p1 = scmp.eq.s32.totalorder %s639_s13, 0 }
   0x8   : > { %p90_p3 = scmp.eq.s32.totalorder %s377_s14, 1  ;;  %p378_p5 = scmp.ge.s32.totalorder %s594_s12, 1 }
   0x9   : > { %p648_p4 = por %p791_p1, %p39_p0  ;;  %p97_p7 = scmp.lt.s32.totalorder %s594_s12, 3 }
   0xa   : > { %p653_p6 = por %p90_p3, %p39_p0  ;;  %s596_s18 = smov [#allocation5]  }
   0xb   : > { %s795_s15 = scalar_select %p648_p4, 1, 0 }
   0xc   : > { %s796_s16 = scalar_select %p653_p6, 1, 0 }
   0xd   : > { %p658_p8 = pnand %p378_p5, %p97_p7  ;;  %s110_s19 = sshll.u32 %s596_s18, 4  ;;  %s111_s19 = int_to_ptr.vmem [resolvable:$true] %s110_s19 }
   0xe   : > { %s666_s20 = sadd.s32 1, %s594_s12   ;;  %s26_s24 = sadd.s32 1, %s590_s11 }
   0xf   : > { %s797_s17 = scalar_select %p658_p8, 1, 0 }
  0x10   : > { %p413_p10 = pneg %p658_p8  ;;  %s23_s22 = ssub.s32 %s594_s12, %s666_s20 }
  0x11   : > { %p676_p12 = scmp.eq.s32.totalorder %s23_s22, 0  ;;  %p33_p13 = scmp.ne.s32.totalorder %s590_s11, %s586_s10 }
  0x12   : > { %p670_p11 = pnand %p413_p10, %p791_p1  ;;  %s483_s25 = scalar_lea.vmem %s111_s19, 64 }
  0x13   : > { %p484_p3 = scmp.ne.s32.totalorder %s111_s19, %s483_s25  ;;  %p491_p9 = scmp.lt.s32.totalorder %s111_s19, %s111_s19 }
  0x14   : > { %p474_p0 = pneg %p670_p11  ;;  %p492_p2 = scmp.lt.s32.totalorder %s483_s25, %s483_s25 }
  0x16   : > { %p486_p5 = pnand %p484_p3, %p474_p0  ;;  %p493_p10 = por %p492_p2, %p491_p9 }
  0x18   : > { %p487_p7 = pneg %p486_p5 }
  0x1a   : > { %p494_p1 = pnand %p493_p10, %p487_p7 }
  0x1c   : > { %497 = shalt.err (!%p494_p1)
}
  0x1d   : > { %416 = dma.hbm_to_vmem [thread:$0]  (!%p670_p11), %s789_s1, 64, %s111_s19, [#allocation6]  }
  0x1e   : > { %s693_s28 = scalar_select %p676_p12, %s590_s11, %s26_s24  }
  0x1f   : > { %p34_p1 = scmp.eq.s32.totalorder %s594_s12, 0  ;;  %p800_p2 = scmp.eq.s32.totalorder %s639_s13, 1 }
  0x20   : > { %p426_p0 = scmp.lt.s32.totalorder %s594_s12, 2  ;;  %s121_s30 = sand.u32 1, %s590_s11  }
  0x21   : > { %p701_p9 = por %p800_p2, %p33_p13  ;;  %p35_p3 = por %p34_p1, %p33_p13 }
  0x22   : > { %s381_s3 = sshll.u32 %s121_s30, 3  ;;  %s396_s4 = sshll.u32 %s594_s12, 7 }
  0x23   : > { %s801_s29 = scalar_select %p701_p9, 1, 0 }
  0x24   : > { %s714_s7 = scalar_lea.hbm %s788_s0, %s396_s4  ;;  %s125_s8 = scalar_lea.vmem [#allocation2], %s381_s3 }
  0x25   : > { %s133_s14 = sshll.u32 %s125_s8, 4  ;;  %p716_p11 = pnand %p426_p0, %p35_p3  ;;  %s134_s14 = int_to_ptr.vmem [resolvable:$true] %s133_s14 }
  0x26   : > { %s122_s19 = scalar_lea.sflag [#allocation3], %s121_s30  ;;  %s498_s21 = scalar_lea.hbm %s714_s7, 128 }
  0x27   : > { %p499_p12 = scmp.ne.s32.totalorder %s714_s7, %s498_s21  ;;  %p500_p13 = pneg %p716_p11 }
  0x28   : > { %s503_s24 = scalar_lea.hbm %s788_s0, 256  ;;  %p504_p10 = scmp.lt.s32.totalorder %s714_s7, %s788_s0 }
  0x29   : > { %p501_p5 = pnand %p500_p13, %p499_p12  ;;  %p505_p1 = scmp.lt.s32.totalorder %s503_s24, %s498_s21 }
  0x2b   : > { %p502_p7 = pneg %p501_p5  ;;  %p506_p2 = por %p505_p1, %p504_p10 }
  0x2d   : > { %p507_p0 = pnand %p506_p2, %p502_p7 }
  0x2f   : > { %510 = shalt.err (!%p507_p0)
}
  0x30   : > { %s511_s27 = scalar_lea.vmem %s134_s14, 128  ;;  %s597_s30 = smov [#allocation2]  }
  0x31   : > { %p512_p3 = scmp.ne.s32.totalorder %s134_s14, %s511_s27  ;;  %s516_s3 = sshll.u32 %s597_s30, 4  ;;  %s517_s3 = int_to_ptr.vmem [resolvable:$false] %s516_s3 }
  0x32   : > { %s518_s4 = scalar_lea.vmem %s517_s3, 256  ;;  %p519_p12 = scmp.lt.s32.totalorder %s134_s14, %s517_s3 }
  0x33   : > { %p514_p6 = pnand %p512_p3, %p500_p13  ;;  %p520_p5 = scmp.lt.s32.totalorder %s518_s4, %s511_s27 }
  0x35   : > { %p515_p9 = pneg %p514_p6  ;;  %p521_p4 = por %p520_p5, %p519_p12 }
  0x37   : > { %p522_p8 = pnand %p521_p4, %p515_p9 }
  0x39   : > { %525 = shalt.err (!%p522_p8)
}
  0x3a   : > { %420 = dma.hbm_to_vmem [thread:$0]  (!%p716_p11), %s714_s7, 128, %s134_s14, %s122_s19  }
  0x3b   : > { %p803_p7 = scmp.ne.s32.totalorder %s797_s17, 0 }
  0x3c   : > { %s737_s5 = sand.u32 (!%p803_p7), 1, %s586_s10   ;;  %p804_p4 = scmp.ne.s32.totalorder (!%p803_p7), %s795_s15, 0 }
  0x3d   : > { %142 = sbr.rel (%p803_p7) target bundleno = 583 (0x247), region = 28  ;;  %s385_s6 = sshll.u32 (!%p803_p7), %s737_s5, 3 }
  0x3e   : > { %s145_s8 = scalar_lea.sflag (!%p803_p7), [#allocation3], %s737_s5  ;;  %s148_s21 = scalar_lea.vmem (!%p803_p7), [#allocation2], %s385_s6 }
  0x42   : > { %569 = dma.done.wait (%p804_p4), %s145_s8, 128  }
  0x43   : > { %571 = vsyncadd (%p804_p4), %s145_s8, 4294967168  ;;  %p805_p6 = scmp.eq.s32.totalorder %s639_s13, 0 }
  0x45   : > { %573 = dma.done.wait (%p805_p6), [#allocation6], 64   ;;  %p806_p8 = pmov %p805_p6 }
  0x46   : > { %vm177_vm0 = vcmask 1043456   ;;  %v173_v0 = vld [vmem:[%s148_s21] sm:$0xff]  ;;  %v598_v5 = vmov 0.0   ;;  %vm599_vm1 = vmmov 0   ;;  %v184_v8 = vld [vmem:[#allocation5] sm:$0xf]  ;;  %v275_v18 = vlaneseq }
  0x47   : > { %575 = vsyncadd (%p806_p8), [#allocation6], 4294967232  ;;  %v175_v1 = vcombine.high %v173_v0, %v173_v0  ;;  %v178_v2 = vsel %vm177_vm0, %v173_v0, 0.0  ;;  %400 = vmatprep.subr.mxu0 %v598_v5  ;;  %402 = vmatprep.mubr.msk.f32.mxu0 %vm599_vm1, %v598_v5  ;;  %vm185_vm2 = vcmask 31744   ;;  %v600_v9 = vmov 0   ;;  %s397_s15 = sshll.u32 %s639_s13, 7 }
  0x48   : > { %466 = vset.pattern.permute.xlu0 %v600_v9  ;;  %v601_v16 = vmov 839922192   ;;  %v276_v20 = vshrl.u32 %v275_v18, 7  ;;  %s172_s17 = scalar_lea.vmem [#allocation7], %s385_s6  ;;  %s295_s19 = scalar_lea.hbm %s790_s2, %s397_s15 }
  0x49   : > { %v179_v3 = vsel %vm177_vm0, %v175_v1, 0.0  ;;  %v273_v17 = vunpack.c.l.s4 %v601_v16  ;;  %s297_s7 = sshll.u32 %s172_s17, 4  ;;  %s283_s22 = scalar_lea.sflag [#allocation4], %s737_s5  ;;  %s298_s7 = int_to_ptr.vmem [resolvable:$true] %s297_s7 }
  0x4a   : > { %v180_v4 = vadd.f32 %v179_v3, %v178_v2  ;;  %s526_s23 = scalar_lea.vmem %s298_s7, 128  ;;  %p807_p11 = scmp.ne.s32.totalorder %s801_s29, 0 }
  0x4b   : > { %v274_v19 = vunpack.c.0.s8 %v273_v17  ;;  %p527_p9 = scmp.ne.s32.totalorder %s298_s7, %s526_s23  ;;  %s602_s24 = smov [#allocation7]  }
  0x4c   : > { %181 = vadd.xlane.f32.xlu0 %v180_v4  ;;  %s530_s25 = sshll.u32 %s602_s24, 4  ;;  %s531_s25 = int_to_ptr.vmem [resolvable:$false] %s530_s25 }
  0x4d   : > { %v277_v21 = vsub.s32 %v274_v19, %v276_v20  ;;  %p528_p13 = pnand %p527_p9, %p807_p11  ;;  %s532_s13 = scalar_lea.vmem %s531_s25, 256 }
  0x4e   : > { %p533_p1 = scmp.lt.s32.totalorder %s298_s7, %s531_s25  ;;  %p534_p2 = scmp.lt.s32.totalorder %s532_s13, %s526_s23 }
  0x4f   : > { %p529_p10 = pneg %p528_p13 }
  0x50   : > { %p535_p0 = por %p534_p2, %p533_p1 }
  0x52   : > { %p536_p3 = pnand %p535_p0, %p529_p10 }
  0xd5   : > { %v182_v6 = vpop.xlane.xlu0 %181 }
  0xd6   : > { %v183_v7 = vmul.f32 0.00390625, %v182_v6 }
  0xd8   : > { %401 = vmatpush3.msk.msra.mxu0 %vm177_vm0, %v183_v7 }
  0xd9   : > { %403 = vmatmul.mubr.msk.f32.vlgmr.msra.gmra.mxu0 %vm185_vm2, %v184_v8 }
 0x199   : > { %v258_v10 = vpop.f32.mrf.mxu0 }
 0x19a   : > { %v390_v11 = vmul.f32 -1.442695, %v258_v10 }
 0x19b   : > { %v404_v12 = vpop.f32.mrf.mxu0 }
 0x19c   : > { %468 = vpow2.f32 %v390_v11 }
 0x1a9   : > { %v469_v13 = vpop.eup %468 }
 0x1aa   : > { %v265_v14 = vadd.f32 1.0, %v469_v13 }
 0x1ac   : > { %470 = vrcp.f32 %v265_v14 }
 0x1b9   : > { %v471_v15 = vpop.eup %470 }
 0x1ba   : > { %270 = vperm.xlu0 %466, %v471_v15  }
 0x235   : > { %v271_v22 = vpop.permute.xlu0 %270 }
 0x236   : > { %v278_v23 = vrot.slane %v271_v22, %v277_v21 }
 0x238   : > { %v280_v24 = vmul.f32 %v278_v23, %v173_v0 }
 0x23a   : > { %281 = vst [vmem:[%s172_s17] sm:$0xff] %v280_v24 }
 0x23b   : > { %539 = shalt.err (!%p536_p3)
}
 0x23c   : > { %s540_s26 = scalar_lea.hbm %s295_s19, 128  ;;  %s544_s3 = scalar_lea.hbm %s790_s2, 256 }
 0x23d   : > { %p541_p12 = scmp.ne.s32.totalorder %s295_s19, %s540_s26  ;;  %p545_p4 = scmp.lt.s32.totalorder %s295_s19, %s790_s2 }
 0x23e   : > { %p546_p6 = scmp.lt.s32.totalorder %s544_s3, %s540_s26 }
 0x23f   : > { %p542_p5 = pnand %p541_p12, %p807_p11 }
 0x240   : > { %p547_p8 = por %p546_p6, %p545_p4 }
 0x241   : > { %p543_p7 = pneg %p542_p5 }
 0x243   : > { %p548_p9 = pnand %p547_p8, %p543_p7 }
 0x245   : > { %551 = shalt.err (!%p548_p9)
}
 0x246   : > { %411 = dma.vmem_to_hbm [thread:$0]  (%p807_p11), %s298_s7, 128, %s295_s19, %s283_s22  }
 0x247 PF: > { %s309_s6 = sand.u32 1, %s582_s9   ;;  %p808_p13 = scmp.ne.s32.totalorder %s796_s16, 0 }
 0x248   : > { %p809_p10 = scmp.ge.s32.totalorder %s594_s12, 2  ;;  %s310_s8 = scalar_lea.sflag [#allocation4], %s309_s6 }
 0x24a   : > { %p422_p1 = pnand %p809_p10, %p808_p13 }
 0x24c   : > { %p423_p2 = pneg %p422_p1 }
 0x24e   : > { %577 = dma.done.wait (%p423_p2), %s310_s8, 128  }
 0x24f   : > { %579 = vsyncadd (%p423_p2), %s310_s8, 4294967168  ;;  %p16_p0 = scmp.ge.s32.totalorder %s666_s20, 4   ;;  %s810_s9 = smov %s586_s10 }
 0x250   : > { %s811_s10 = smov %s590_s11  ;;  %s812_s11 = smov %s693_s28 }
 0x251   : > { %s813_s12 = smov %s666_s20  ;;  %18 = sbr.rel (!%p16_p0) target bundleno = 6 (0x6), region = 77 }
 0x256   :  { %315 = vsyncpa [#allocation3], 1 }
 0x257   :  { %317 = vsyncpa [#allocation3 + $0x1], 1 }
 0x258   :  { %318 = vsyncpa [#allocation6], 1 }
 0x259   :  { %319 = vsyncpa [#allocation4], 1 }
 0x25a   :  { %321 = vsyncpa [#allocation4 + $0x1], 1 }

</bundles_post_ra>
